<compile_context>
chip_gen: v5e
topology: v5e:2x2
jax: 0.10.0
libtpu: 0.0.40
codegen_flags: <defaults>
</compile_context>

<pallas_src>
import math

import jax
import jax.numpy as jnp
from jax.experimental import pallas as pl
from jax.experimental.pallas import tpu as pltpu

BN_EPS = 1e-5
NEG_SLOPE = 0.2
LANE = 128          # TPU lane width
HIDDEN = 256
_MIN_VMEM_BYTES = 64 * 1024 * 1024   # v7x per-TC VMEM (smallest of v5e/v6e/v7x)


def _bn_leaky(h, gamma, beta):
    """Training-mode BatchNorm1d + LeakyReLU(0.2); all statistics in f32.

    Two-pass variance (mean first, then E[(h-mean)^2]) for robustness when
    |mean| >> std; with centered activations the affine BN is just
    centered*scale + beta. rsqrt runs on the otherwise-idle EUP slot.
    """
    inv_n = 1.0 / h.shape[0]
    mean = jnp.sum(h, axis=0, keepdims=True) * inv_n
    centered = h - mean
    var = jnp.sum(centered * centered, axis=0, keepdims=True) * inv_n
    scale = gamma * jax.lax.rsqrt(var + BN_EPS)          # EUP rsqrt
    h = centered * scale + beta
    # LeakyReLU(0.2) as mul+max (valid since NEG_SLOPE > 0): 2 VALU ops vs 3.
    return jnp.maximum(h, NEG_SLOPE * h)
    # NOTE: if VALU/XLU ever binds at very large B, the two axis-0 reductions
    # can move onto the underutilized MXU via ones(1, B) @ h / @ centered^2.


def classifier_kernel(z_ref,
                      w1_ref, g1_ref, be1_ref,
                      w2_ref, g2_ref, be2_ref,
                      w3_ref, b3_ref,
                      out_ref):
    # fc_1 (bias dropped: cancelled exactly by the training-mode batch-mean
    # subtraction) + fused BN + LeakyReLU.  z arrives pre-cast to bf16.
    h = jnp.dot(z_ref[...], w1_ref[...], preferred_element_type=jnp.float32)
    h = _bn_leaky(h, g1_ref[...], be1_ref[...])

    # fc_2 (bias dropped) + fused BN + LeakyReLU.
    h = jnp.dot(h.astype(jnp.bfloat16), w2_ref[...],
                preferred_element_type=jnp.float32)
    h = _bn_leaky(h, g2_ref[...], be2_ref[...])

    # fc_3 into a lane-dense (B, 128k)-padded logits slab (unmasked vst).
    out = jnp.dot(h.astype(jnp.bfloat16), w3_ref[...],
                  preferred_element_type=jnp.float32) + b3_ref[...]
    out_ref[...] = out.astype(out_ref.dtype)


def _pad_lanes(a, n_pad):
    return jnp.pad(a, ((0, 0), (0, n_pad - a.shape[-1])))


def prepare_params(params):
    """One-time conversion of PyTorch-layout params to kernel params.

    Drops b1/b2 (mathematically dead under training-mode BN), zero-pads the
    final projection to a 128-lane multiple (padded logits are exact zeros),
    and pre-casts matmul weights to bf16.
    """
    w1, _b1, g1, be1, w2, _b2, g2, be2, w3, b3 = params
    n_pad = LANE * pl.cdiv(w3.shape[-1], LANE)
    w3p = _pad_lanes(w3, n_pad).astype(jnp.bfloat16)
    b3p = _pad_lanes(b3, n_pad)                      # bias stays f32
    return (w1.astype(jnp.bfloat16), g1, be1,
            w2.astype(jnp.bfloat16), g2, be2,
            w3p, b3p)


def classifier_forward(z, kparams, num_classes, *, return_padded=False):
    """z: (B, z_dim) float. kparams: output of prepare_params.

    return_padded=True returns the lane-dense (B, 128*ceil(C/128)) f32 slab
    (lanes >= num_classes are exact zeros). A fused downstream consumer
    (softmax / loss / argmax) should mask those lanes and consume the slab
    directly, avoiding the padded-write + re-read + slice-rewrite HBM round
    trip of the default sliced path.
    """
    B, z_dim = z.shape
    w1, g1, be1, w2, g2, be2, w3p, b3p = kparams
    n_pad = w3p.shape[-1]

    # Cast z to bf16 at the call site: halves the largest input DMA stream.
    z = z.astype(jnp.bfloat16)

    # ---- VMEM budget (whole batch resident; BN needs the full batch). ----
    weight_bytes = ((w1.size + w2.size + w3p.size) * 2 +
                    (g1.size + be1.size + g2.size + be2.size + b3p.size) * 4)
    per_row_bytes = z_dim * 2 + HIDDEN * 4 + HIDDEN * 2 + n_pad * 4
    needed = 2 * (weight_bytes + B * per_row_bytes)     # 2x headroom for temps
    try:
        vmem_cap = int(pltpu.get_tpu_info().vmem_capacity_bytes)
    except Exception:
        vmem_cap = _MIN_VMEM_BYTES
    if needed > vmem_cap:
        # TODO(synk): batch-tiled multi-sweep BN variant for B beyond the
        # VMEM ceiling (see header comment).
        raise ValueError(
            f"batch {B} does not fit the whole-batch-resident design "
            f"(~{needed / 2**20:.1f} MiB needed vs {vmem_cap / 2**20:.0f} MiB "
            "VMEM); use the batch-tiled multi-sweep BatchNorm variant.")
    vmem_limit = int(min(vmem_cap, max(needed, 16 * 1024 * 1024)))

    cost = pl.CostEstimate(
        flops=2 * B * (z_dim * HIDDEN + HIDDEN * HIDDEN + HIDDEN * n_pad),
        transcendentals=2 * HIDDEN,                      # rsqrt per BN feature
        bytes_accessed=z.size * 2 + weight_bytes + B * n_pad * 4,
    )

    vmem = pl.BlockSpec(memory_space=pltpu.MemorySpace.VMEM)
    out_padded = pl.pallas_call(
        classifier_kernel,
        out_shape=jax.ShapeDtypeStruct((B, n_pad), jnp.float32),
        in_specs=[vmem] * (1 + len(kparams)),
        out_specs=vmem,
        compiler_params=pltpu.CompilerParams(vmem_limit_bytes=vmem_limit),
        cost_estimate=cost,
    )(z, *kparams)

    if return_padded:
        return out_padded
    return out_padded[:, :num_classes]


def init_params(key, z_dim, num_classes, hidden=HIDDEN):
    """Deterministic init mimicking PyTorch defaults (U(-1/sqrt(fan_in), +))."""
    ks = jax.random.split(key, 6)

    def linear(kw, kb, fan_in, fan_out):
        bound = 1.0 / math.sqrt(fan_in)
        w = jax.random.uniform(kw, (fan_in, fan_out), jnp.float32, -bound, bound)
        b = jax.random.uniform(kb, (1, fan_out), jnp.float32, -bound, bound)
        return w, b

    w1, b1 = linear(ks[0], ks[1], z_dim, hidden)
    w2, b2 = linear(ks[2], ks[3], hidden, hidden)
    w3, b3 = linear(ks[4], ks[5], hidden, num_classes)

    # BatchNorm affine params (PyTorch default: gamma=1, beta=0)
    g1 = jnp.ones((1, hidden), jnp.float32)
    be1 = jnp.zeros((1, hidden), jnp.float32)
    g2 = jnp.ones((1, hidden), jnp.float32)
    be2 = jnp.zeros((1, hidden), jnp.float32)

    return (w1, b1, g1, be1, w2, b2, g2, be2, w3, b3)


if __name__ == "__main__":
    B, Z_DIM, NUM_CLASSES = 8, 32, 10

    key = jax.random.PRNGKey(0)
    k_z, k_p = jax.random.split(key)
    z = jax.random.normal(k_z, (B, Z_DIM), jnp.float32)
    params = init_params(k_p, Z_DIM, NUM_CLASSES)     # full PyTorch-style params
    kparams = prepare_params(params)                   # kernel-layout params

    # Consume the lane-dense padded slab directly (review option (b)): the
    # consumer masks lanes >= NUM_CLASSES instead of paying the padded-write +
    # re-read + slice-rewrite HBM round trip in the hot path.
    out_padded = classifier_forward(z, kparams, NUM_CLASSES, return_padded=True)
    out_padded = jax.block_until_ready(out_padded)
    assert out_padded.shape[0] == B and out_padded.shape[1] % LANE == 0
    assert out_padded.dtype == jnp.float32
    # Padded lanes are exact zeros (zero-padded w3/b3 columns).
    assert bool(jnp.all(out_padded[:, NUM_CLASSES:] == 0.0))

    out = out_padded[:, :NUM_CLASSES]                 # consumer-side lane mask
    assert out.shape == (B, NUM_CLASSES)

    # Pure-JAX reference with the *original* module semantics (biases present,
    # standard two-pass BN / explicit gamma-beta form); matmul inputs cast to
    # bf16 to match the kernel's MXU numerics. Validates that dropping b1/b2
    # and the fused centered*scale+beta BN are numerically equivalent.
    def ref(z, p):
        w1, b1, g1, be1, w2, b2, g2, be2, w3, b3 = p

        def mm(a, w):
            return jnp.dot(a.astype(jnp.bfloat16), w.astype(jnp.bfloat16),
                           preferred_element_type=jnp.float32)

        def bnl(h, g, be):
            m = h.mean(0, keepdims=True)
            v = ((h - m) ** 2).mean(0, keepdims=True)
            h = (h - m) / jnp.sqrt(v + BN_EPS) * g + be
            return jnp.where(h >= 0, h, NEG_SLOPE * h)

        h = bnl(mm(z, w1) + b1, g1, be1)
        h = bnl(mm(h, w2) + b2, g2, be2)
        return mm(h, w3) + b3

    expected = ref(z, params)
    assert jnp.allclose(out, expected, atol=2e-3, rtol=2e-3), (
        float(jnp.max(jnp.abs(out - expected))))

    print("KERNEL_OK")
</pallas_src>

<mosaic_0001>
module attributes {stable_mosaic.version = 11 : i64} {
  func.func @classifier_kernel(%arg0: memref<8x32xbf16, #tpu.memory_space<vmem>>, %arg1: memref<32x256xbf16, #tpu.memory_space<vmem>>, %arg2: memref<1x256xf32, #tpu.memory_space<vmem>>, %arg3: memref<1x256xf32, #tpu.memory_space<vmem>>, %arg4: memref<256x256xbf16, #tpu.memory_space<vmem>>, %arg5: memref<1x256xf32, #tpu.memory_space<vmem>>, %arg6: memref<1x256xf32, #tpu.memory_space<vmem>>, %arg7: memref<256x128xbf16, #tpu.memory_space<vmem>>, %arg8: memref<1x128xf32, #tpu.memory_space<vmem>>, %arg9: memref<8x128xf32, #tpu.memory_space<vmem>>) attributes {dimension_semantics = [], scalar_prefetch = 0 : i64, scratch_operands = 0 : i64, tpu.core_type = #tpu.core_type<tc>} {
    %c0 = arith.constant 0 : index
    %c0_0 = arith.constant 0 : index
    %0 = vector.load %arg0[%c0, %c0_0] : memref<8x32xbf16, #tpu.memory_space<vmem>>, vector<8x32xbf16>
    %c0_1 = arith.constant 0 : index
    %c0_2 = arith.constant 0 : index
    %1 = vector.load %arg1[%c0_1, %c0_2] : memref<32x256xbf16, #tpu.memory_space<vmem>>, vector<32x256xbf16>
    %cst = arith.constant dense<0.000000e+00> : vector<8x256xf32>
    %2 = tpu.matmul %0, %1, %cst {dimension_numbers = #tpu.dot_dimension_numbers<[1], [0], [0], [1], [0, 0, 1, 1], [], []>} : vector<8x32xbf16>, vector<32x256xbf16>, vector<8x256xf32> -> vector<8x256xf32>
    %c0_3 = arith.constant 0 : index
    %c0_4 = arith.constant 0 : index
    %3 = vector.load %arg2[%c0_3, %c0_4] : memref<1x256xf32, #tpu.memory_space<vmem>>, vector<1x256xf32>
    %c0_5 = arith.constant 0 : index
    %c0_6 = arith.constant 0 : index
    %4 = vector.load %arg3[%c0_5, %c0_6] : memref<1x256xf32, #tpu.memory_space<vmem>>, vector<1x256xf32>
    %cst_7 = arith.constant dense<0.000000e+00> : vector<256xf32>
    %5 = vector.multi_reduction <add>, %2, %cst_7 [0] : vector<8x256xf32> to vector<256xf32>
    %6 = vector.shape_cast %5 : vector<256xf32> to vector<1x256xf32>
    %cst_8 = arith.constant 1.250000e-01 : f32
    %7 = vector.broadcast %cst_8 : f32 to vector<1x256xf32>
    %8 = arith.mulf %6, %7 : vector<1x256xf32>
    %9 = vector.broadcast %8 : vector<1x256xf32> to vector<8x256xf32>
    %10 = arith.subf %2, %9 : vector<8x256xf32>
    %11 = arith.mulf %10, %10 : vector<8x256xf32>
    %cst_9 = arith.constant dense<0.000000e+00> : vector<256xf32>
    %12 = vector.multi_reduction <add>, %11, %cst_9 [0] : vector<8x256xf32> to vector<256xf32>
    %13 = vector.shape_cast %12 : vector<256xf32> to vector<1x256xf32>
    %cst_10 = arith.constant 1.250000e-01 : f32
    %14 = vector.broadcast %cst_10 : f32 to vector<1x256xf32>
    %15 = arith.mulf %13, %14 : vector<1x256xf32>
    %cst_11 = arith.constant 9.99999974E-6 : f32
    %16 = vector.broadcast %cst_11 : f32 to vector<1x256xf32>
    %17 = arith.addf %15, %16 : vector<1x256xf32>
    %18 = math.rsqrt %17 : vector<1x256xf32>
    %19 = arith.mulf %3, %18 : vector<1x256xf32>
    %20 = vector.broadcast %19 : vector<1x256xf32> to vector<8x256xf32>
    %21 = arith.mulf %10, %20 : vector<8x256xf32>
    %22 = vector.broadcast %4 : vector<1x256xf32> to vector<8x256xf32>
    %23 = arith.addf %21, %22 : vector<8x256xf32>
    %cst_12 = arith.constant 2.000000e-01 : f32
    %24 = vector.broadcast %cst_12 : f32 to vector<8x256xf32>
    %25 = arith.mulf %24, %23 : vector<8x256xf32>
    %26 = arith.maximumf %23, %25 : vector<8x256xf32>
    %27 = arith.truncf %26 : vector<8x256xf32> to vector<8x256xbf16>
    %c0_13 = arith.constant 0 : index
    %c0_14 = arith.constant 0 : index
    %28 = vector.load %arg4[%c0_13, %c0_14] : memref<256x256xbf16, #tpu.memory_space<vmem>>, vector<256x256xbf16>
    %cst_15 = arith.constant dense<0.000000e+00> : vector<8x256xf32>
    %29 = tpu.matmul %27, %28, %cst_15 {dimension_numbers = #tpu.dot_dimension_numbers<[1], [0], [0], [1], [0, 0, 1, 1], [], []>} : vector<8x256xbf16>, vector<256x256xbf16>, vector<8x256xf32> -> vector<8x256xf32>
    %c0_16 = arith.constant 0 : index
    %c0_17 = arith.constant 0 : index
    %30 = vector.load %arg5[%c0_16, %c0_17] : memref<1x256xf32, #tpu.memory_space<vmem>>, vector<1x256xf32>
    %c0_18 = arith.constant 0 : index
    %c0_19 = arith.constant 0 : index
    %31 = vector.load %arg6[%c0_18, %c0_19] : memref<1x256xf32, #tpu.memory_space<vmem>>, vector<1x256xf32>
    %cst_20 = arith.constant dense<0.000000e+00> : vector<256xf32>
    %32 = vector.multi_reduction <add>, %29, %cst_20 [0] : vector<8x256xf32> to vector<256xf32>
    %33 = vector.shape_cast %32 : vector<256xf32> to vector<1x256xf32>
    %cst_21 = arith.constant 1.250000e-01 : f32
    %34 = vector.broadcast %cst_21 : f32 to vector<1x256xf32>
    %35 = arith.mulf %33, %34 : vector<1x256xf32>
    %36 = vector.broadcast %35 : vector<1x256xf32> to vector<8x256xf32>
    %37 = arith.subf %29, %36 : vector<8x256xf32>
    %38 = arith.mulf %37, %37 : vector<8x256xf32>
    %cst_22 = arith.constant dense<0.000000e+00> : vector<256xf32>
    %39 = vector.multi_reduction <add>, %38, %cst_22 [0] : vector<8x256xf32> to vector<256xf32>
    %40 = vector.shape_cast %39 : vector<256xf32> to vector<1x256xf32>
    %cst_23 = arith.constant 1.250000e-01 : f32
    %41 = vector.broadcast %cst_23 : f32 to vector<1x256xf32>
    %42 = arith.mulf %40, %41 : vector<1x256xf32>
    %cst_24 = arith.constant 9.99999974E-6 : f32
    %43 = vector.broadcast %cst_24 : f32 to vector<1x256xf32>
    %44 = arith.addf %42, %43 : vector<1x256xf32>
    %45 = math.rsqrt %44 : vector<1x256xf32>
    %46 = arith.mulf %30, %45 : vector<1x256xf32>
    %47 = vector.broadcast %46 : vector<1x256xf32> to vector<8x256xf32>
    %48 = arith.mulf %37, %47 : vector<8x256xf32>
    %49 = vector.broadcast %31 : vector<1x256xf32> to vector<8x256xf32>
    %50 = arith.addf %48, %49 : vector<8x256xf32>
    %cst_25 = arith.constant 2.000000e-01 : f32
    %51 = vector.broadcast %cst_25 : f32 to vector<8x256xf32>
    %52 = arith.mulf %51, %50 : vector<8x256xf32>
    %53 = arith.maximumf %50, %52 : vector<8x256xf32>
    %54 = arith.truncf %53 : vector<8x256xf32> to vector<8x256xbf16>
    %c0_26 = arith.constant 0 : index
    %c0_27 = arith.constant 0 : index
    %55 = vector.load %arg7[%c0_26, %c0_27] : memref<256x128xbf16, #tpu.memory_space<vmem>>, vector<256x128xbf16>
    %cst_28 = arith.constant dense<0.000000e+00> : vector<8x128xf32>
    %56 = tpu.matmul %54, %55, %cst_28 {dimension_numbers = #tpu.dot_dimension_numbers<[1], [0], [0], [1], [0, 0, 1, 1], [], []>} : vector<8x256xbf16>, vector<256x128xbf16>, vector<8x128xf32> -> vector<8x128xf32>
    %c0_29 = arith.constant 0 : index
    %c0_30 = arith.constant 0 : index
    %57 = vector.load %arg8[%c0_29, %c0_30] : memref<1x128xf32, #tpu.memory_space<vmem>>, vector<1x128xf32>
    %58 = vector.broadcast %57 : vector<1x128xf32> to vector<8x128xf32>
    %59 = arith.addf %56, %58 : vector<8x128xf32>
    %c0_31 = arith.constant 0 : index
    %c0_32 = arith.constant 0 : index
    %60 = vector.load %arg9[%c0_31, %c0_32] : memref<8x128xf32, #tpu.memory_space<vmem>>, vector<8x128xf32>
    tpu.vector_store %arg9[%c0_31, %c0_32], %59 {strides = array<i32>} : memref<8x128xf32, #tpu.memory_space<vmem>>, vector<8x128xf32>,
    return
  }
}

</mosaic_0001>

<bundles_post_ra>
// kernel: tpu_custom_call.1
= control target key start
LH: loop header
LB: loop body
LE: loop exit
PB: predicated region body
PF: predicated region fallthrough
CT: control target
= control target key end

     0   :  { %14 = vsyncpa [#allocation3], 0  ;;  %s1338_s0 = inlined_call_operand.hbm [shape: bf16[8,32], index: 0, kind: input, shape index: {}]   ;;  %s1339_s1 = inlined_call_operand.hbm [shape: bf16[32,256], index: 1, kind: input, shape index: {}]   ;;  %s1340_s2 = inlined_call_operand.hbm [shape: f32[1,256], index: 2, kind: input, shape index: {}]   ;;  %s1341_s3 = inlined_call_operand.vmem [shape: f32[1,256], index: 3, kind: input, shape index: {}]   ;;  %s1342_s4 = inlined_call_operand.hbm [shape: bf16[256,256], index: 4, kind: input, shape index: {}]   ;;  %s1343_s5 = inlined_call_operand.vmem [shape: f32[1,256], index: 5, kind: input, shape index: {}]   ;;  %s1344_s6 = inlined_call_operand.hbm [shape: f32[1,256], index: 6, kind: input, shape index: {}]   ;;  %s1345_s7 = inlined_call_operand.hbm [shape: bf16[256,128], index: 7, kind: input, shape index: {}]   ;;  %s1346_s8 = inlined_call_operand.vmem [shape: f32[1,128], index: 8, kind: input, shape index: {}]   ;;  %s1347_s9 = inlined_call_operand.hbm [shape: f32[8,128], index: 9, kind: output, shape index: {}]  }
   0x1   :  { %15 = vsyncpa [#allocation6], 0 }
   0x2   :  { %16 = vsyncpa [#allocation9], 0 }
   0x3   :  { %17 = vsyncpa [#allocation12], 0  ;;  %s34_s11 = sshll.u32 %s1339_s1, 4  ;;  %s35_s11 = int_to_ptr.hbm [resolvable:$true] %s34_s11 }
   0x4   :  { %18 = vsyncpa [#allocation4], 0  ;;  %s1225_s12 = smov [#allocation5]   ;;  %s60_s16 = sshll.u32 %s1342_s4, 4  ;;  %s61_s16 = int_to_ptr.hbm [resolvable:$true] %s60_s16 }
   0x5   :  { %s36_s13 = sshll.u32 %s1225_s12, 4  ;;  %s1226_s17 = smov 128   ;;  %s37_s13 = int_to_ptr.vmem [resolvable:$true] %s36_s13 }
   0x6   :  { %s1227_s18 = smov 8   ;;  %s1228_s19 = smov [#allocation8]  }
   0x7   :  { %42 = dma.hbm_to_vmem [thread:$0]  %s35_s11, 512, %s37_s13, [#allocation6], %s1226_s17, %s1226_s17, %s1227_s18  }
   0x8   :  { %s62_s20 = sshll.u32 %s1228_s19, 4  ;;  %s24_s23 = sshll.u32 %s1338_s0, 4  ;;  %s63_s20 = int_to_ptr.vmem [resolvable:$true] %s62_s20  ;;  %s25_s23 = int_to_ptr.hbm [resolvable:$true] %s24_s23 }
   0x9   :  { %68 = dma.hbm_to_vmem [thread:$0]  %s61_s16, 4096, %s63_s20, [#allocation9], %s1226_s17, %s1226_s17, %s1227_s18  }
   0xa   :  { %s48_s25 = sshll.u32 %s1340_s2, 4  ;;  %s1229_s26 = smov [#allocation2]   ;;  %s49_s25 = int_to_ptr.hbm [resolvable:$true] %s48_s25 }
   0xb   :  { %s26_s27 = sshll.u32 %s1229_s26, 4  ;;  %s1230_s4 = smov [#allocation7]   ;;  %s27_s27 = int_to_ptr.vmem [resolvable:$true] %s26_s27 }
   0xc   :  { %29 = dma.hbm_to_vmem [thread:$0]  %s25_s23, 64, %s27_s27, [#allocation3]  }
   0xd   :  { %s50_s28 = sshll.u32 %s1230_s4, 4  ;;  %s76_s10 = sshll.u32 %s1344_s6, 4  ;;  %s51_s28 = int_to_ptr.vmem [resolvable:$true] %s50_s28  ;;  %s77_s10 = int_to_ptr.hbm [resolvable:$true] %s76_s10 }
   0xe   :  { %53 = dma.hbm_to_vmem [thread:$0]  %s49_s25, 32, %s51_s28, [#allocation6]  }
   0xf   :  { %s86_s12 = sshll.u32 %s1345_s7, 4  ;;  %s1231_s13 = smov [#allocation10]   ;;  %s87_s12 = int_to_ptr.hbm [resolvable:$true] %s86_s12 }
  0x10   :  { %s78_s2 = sshll.u32 %s1231_s13, 4  ;;  %s1232_s14 = smov [#allocation11]   ;;  %s79_s2 = int_to_ptr.vmem [resolvable:$true] %s78_s2 }
  0x11   :  { %81 = dma.hbm_to_vmem [thread:$0]  %s77_s10, 32, %s79_s2, [#allocation9]  }
  0x12   :  { %s88_s15 = sshll.u32 %s1232_s14, 4  ;;  %s1233_s16 = smov 64   ;;  %s89_s15 = int_to_ptr.vmem [resolvable:$true] %s88_s15 }
  0x13   :  { %s1234_s17 = smov 4  }
  0x14   :  { %94 = dma.hbm_to_vmem [thread:$0]  %s87_s12, 2048, %s89_s15, [#allocation12], %s1233_s16, %s1233_s16, %s1234_s17  }
  0x15   :  { %1215 = dma.done.wait [#allocation3], 64  }
  0x16   :  { %1216 = vsyncadd [#allocation3], 4294967232 }
  0x17   :  { %1217 = dma.done.wait [#allocation6], 544  }
  0x18   :  { %1218 = vsyncadd [#allocation6], 4294966752 }
  0x19   :  { %1219 = dma.done.wait [#allocation9], 4128  }
  0x1a   :  { %1220 = vsyncadd [#allocation9], 4294963168 }
  0x1b   :  { %1221 = dma.done.wait [#allocation12], 2048  }
  0x1c   :  { %1222 = vsyncadd [#allocation12], 4294965248  ;;  %v775_v0 = vld [vmem:[#allocation5 + $0x10] sm:$0xf]  ;;  %v978_v1 = vld [vmem:[#allocation5 + $0x14] sm:$0xf0] }
  0x1d   :  { %v977_v2 = vld [vmem:[#allocation5 + $0x14] sm:$0xf]  ;;  %v776_v3 = vor.u32 %v978_v1, %v775_v0  ;;  %v777_v4 = vld [vmem:[#allocation5 + $0x18] sm:$0xf0]  ;;  %v767_v5 = vld [vmem:[#allocation5] sm:$0xf] }
  0x1e   :  { %v976_v6 = vld [vmem:[#allocation5 + $0x4] sm:$0xf0]  ;;  %v780_v7 = vor.u32 %v977_v2, %v777_v4  ;;  %v975_v8 = vld [vmem:[#allocation5 + $0x4] sm:$0xf]  ;;  %v769_v9 = vld [vmem:[#allocation5 + $0x8] sm:$0xf0] }
  0x1f   :  { %157 = vmatpush.bf16.msra.mxu0 %v776_v3  ;;  %v768_v10 = vor.u32 %v976_v6, %v767_v5  ;;  %v772_v11 = vor.u32 %v975_v8, %v769_v9  ;;  %v122_v12 = vld [vmem:[#allocation2] sm:$0xf]  ;;  %vm147_vm0 = vcmask 261120   ;;  %v841_v20 = vld [vmem:[#allocation8 + $0x70] sm:$0xf]  ;;  %vm236_vm6 = vcmask 1040384  }
  0x20   :  { %170 = vmatpush.bf16.msra.mxu1 %v780_v7  ;;  %v994_v21 = vld [vmem:[#allocation8 + $0x74] sm:$0xf0]  ;;  %v905_v24 = vld [vmem:[#allocation8 + $0xf0] sm:$0xf]  ;;  %v993_v28 = vld [vmem:[#allocation8 + $0x74] sm:$0xf] }
  0x21   :  { %v842_v23 = vor.u32 %v994_v21, %v841_v20  ;;  %v1010_v25 = vld [vmem:[#allocation8 + $0xf4] sm:$0xf0]  ;;  %v843_v29 = vld [vmem:[#allocation8 + $0x78] sm:$0xf0]  ;;  %v1009_v30 = vld [vmem:[#allocation8 + $0xf4] sm:$0xf] }
  0x22   :  { %v906_v27 = vor.u32 %v1010_v25, %v905_v24  ;;  %v846_v33 = vor.u32 %v993_v28, %v843_v29  ;;  %v907_v34 = vld [vmem:[#allocation8 + $0xf8] sm:$0xf0]  ;;  %v833_v38 = vld [vmem:[#allocation8 + $0x60] sm:$0xf]  ;;  %v992_v39 = vld [vmem:[#allocation8 + $0x64] sm:$0xf0] }
  0x23   :  { %158 = vmatpush.bf16.msra.mxu0 %v768_v10  ;;  %452 = vmatpush.bf16.msra.mxu2 %v842_v23  ;;  %v910_v37 = vor.u32 %v1009_v30, %v907_v34  ;;  %v834_v41 = vor.u32 %v992_v39, %v833_v38  ;;  %v897_v42 = vld [vmem:[#allocation8 + $0xe0] sm:$0xf]  ;;  %v1008_v43 = vld [vmem:[#allocation8 + $0xe4] sm:$0xf0]  ;;  %v991_v46 = vld [vmem:[#allocation8 + $0x64] sm:$0xf] }
  0x24   :  { %171 = vmatpush.bf16.msra.mxu1 %v772_v11  ;;  %465 = vmatpush.bf16.msra.mxu3 %v906_v27  ;;  %v898_v45 = vor.u32 %v1008_v43, %v897_v42  ;;  %v835_v47 = vld [vmem:[#allocation8 + $0x68] sm:$0xf0]  ;;  %v1007_v48 = vld [vmem:[#allocation8 + $0xe4] sm:$0xf]  ;;  %v825_v54 = vld [vmem:[#allocation8 + $0x50] sm:$0xf] }
  0x25   :  { %v838_v50 = vor.u32 %v991_v46, %v835_v47  ;;  %v899_v51 = vld [vmem:[#allocation8 + $0xe8] sm:$0xf0]  ;;  %v990_v55 = vld [vmem:[#allocation8 + $0x54] sm:$0xf0]  ;;  %v889_v58 = vld [vmem:[#allocation8 + $0xd0] sm:$0xf] }
  0x26   :  { %781 = vmatmul.msk.bf16.vlgmr.msra.gmra.mxu0 %vm147_vm0, %v122_v12  ;;  %v902_v53 = vor.u32 %v1007_v48, %v899_v51  ;;  %v826_v57 = vor.u32 %v990_v55, %v825_v54  ;;  %v1006_v60 = vld [vmem:[#allocation8 + $0xd4] sm:$0xf0]  ;;  %v989_v61 = vld [vmem:[#allocation8 + $0x54] sm:$0xf]  ;;  %v827_v62 = vld [vmem:[#allocation8 + $0x58] sm:$0xf0] }
  0x27   :  { %782 = vmatmul.msk.bf16.vlgmr.msra.gmra.mxu1 %vm147_vm0, %v122_v12  ;;  %478 = vmatpush.bf16.msrb.mxu0 %v846_v33  ;;  %v890_v0 = vor.u32 %v1006_v60, %v889_v58  ;;  %v830_v1 = vor.u32 %v989_v61, %v827_v62  ;;  %v1005_v2 = vld [vmem:[#allocation8 + $0xd4] sm:$0xf]  ;;  %v891_v3 = vld [vmem:[#allocation8 + $0xd8] sm:$0xf0]  ;;  %v817_v6 = vld [vmem:[#allocation8 + $0x40] sm:$0xf] }
  0x28   :  { %491 = vmatpush.bf16.msrb.mxu1 %v910_v37  ;;  %453 = vmatpush.bf16.msra.mxu2 %v834_v41  ;;  %v894_v5 = vor.u32 %v1005_v2, %v891_v3  ;;  %v988_v7 = vld [vmem:[#allocation8 + $0x44] sm:$0xf0]  ;;  %v881_v8 = vld [vmem:[#allocation8 + $0xc0] sm:$0xf]  ;;  %v987_v12 = vld [vmem:[#allocation8 + $0x44] sm:$0xf] }
  0x29   :  { %466 = vmatpush.bf16.msra.mxu3 %v898_v45  ;;  %v818_v10 = vor.u32 %v988_v7, %v817_v6  ;;  %v1004_v11 = vld [vmem:[#allocation8 + $0xc4] sm:$0xf0]  ;;  %v986_v23 = vld [vmem:[#allocation8 + $0x34] sm:$0xf0]  ;;  %v873_v24 = vld [vmem:[#allocation8 + $0xb0] sm:$0xf] }
  0x2a   :  { %v1002_v27 = vld [vmem:[#allocation8 + $0xb4] sm:$0xf0]  ;;  %v985_v28 = vld [vmem:[#allocation8 + $0x34] sm:$0xf]  ;;  %v801_v38 = vld [vmem:[#allocation8 + $0x20] sm:$0xf] }
  0x2b   :  { %479 = vmatpush.bf16.msrb.mxu0 %v838_v50  ;;  %v874_v30 = vor.u32 %v1002_v27, %v873_v24  ;;  %v984_v39 = vld [vmem:[#allocation8 + $0x24] sm:$0xf0]  ;;  %v803_v45 = vld [vmem:[#allocation8 + $0x28] sm:$0xf0]  ;;  %v793_v54 = vld [vmem:[#allocation8 + $0x10] sm:$0xf] }
  0x2c   :  { %492 = vmatpush.bf16.msrb.mxu1 %v902_v53  ;;  %454 = vmatpush.bf16.msra.mxu2 %v826_v57  ;;  %v802_v42 = vor.u32 %v984_v39, %v801_v38  ;;  %v1000_v43 = vld [vmem:[#allocation8 + $0xa4] sm:$0xf0]  ;;  %v867_v50 = vld [vmem:[#allocation8 + $0xa8] sm:$0xf0]  ;;  %v982_v55 = vld [vmem:[#allocation8 + $0x14] sm:$0xf0] }
  0x2d   :  { %467 = vmatpush.bf16.msra.mxu3 %v890_v0  ;;  %v794_v58 = vor.u32 %v982_v55, %v793_v54  ;;  %v998_v60 = vld [vmem:[#allocation8 + $0x94] sm:$0xf0]  ;;  %v981_v61 = vld [vmem:[#allocation8 + $0x14] sm:$0xf]  ;;  %v795_v62 = vld [vmem:[#allocation8 + $0x18] sm:$0xf0] }
  0x2e   :  { %v798_v2 = vor.u32 %v981_v61, %v795_v62  ;;  %v997_v3 = vld [vmem:[#allocation8 + $0x94] sm:$0xf]  ;;  %v785_v7 = vld [vmem:[#allocation8] sm:$0xf]  ;;  %v178_v38 = vld [vmem:[%s1341_s3] sm:$0x3] }
  0x2f   :  { %480 = vmatpush.bf16.msrb.mxu0 %v830_v1  ;;  %s1235_s20 = smov [#allocation13]   ;;  %s752_s1 = sshll.u32 %s1347_s9, 4  ;;  %s753_s1 = int_to_ptr.hbm [resolvable:$true] %s752_s1 }
  0x30   :  { %493 = vmatpush.bf16.msrb.mxu1 %v894_v5  ;;  %455 = vmatpush.bf16.msra.mxu2 %v818_v10  ;;  %s750_s21 = sshll.u32 %s1235_s20, 4  ;;  %s751_s21 = int_to_ptr.vmem [resolvable:$true] %s750_s21 }
  0xa3   :  { %v160_v13 = vpop.f32.mrf.mxu0 }
  0xa4   :  { %v179_v14 = vrot.slane %v160_v13, 4  ;;  %v173_v15 = vpop.f32.mrf.mxu1 }
  0xa5   :  { %v185_v16 = vrot.slane %v173_v15, 4 }
  0xa6   :  { %v180_v17 = vadd.f32 %v179_v14, %v160_v13 }
  0xa7   :  { %v186_v18 = vadd.f32 %v185_v16, %v173_v15 }
  0xa8   :  { %v181_v19 = vrot.slane %v180_v17, 2 }
  0xa9   :  { %v187_v22 = vrot.slane %v186_v18, 2 }
  0xaa   :  { %v182_v26 = vadd.f32 %v181_v19, %v180_v17  ;;  %v1003_v17 = vld [vmem:[#allocation8 + $0xc4] sm:$0xf] }
  0xab   :  { %v188_v31 = vadd.f32 %v187_v22, %v186_v18  ;;  %v162_v32 = vpop.f32.mrf.mxu0  ;;  %v883_v18 = vld [vmem:[#allocation8 + $0xc8] sm:$0xf0]  ;;  %v809_v22 = vld [vmem:[#allocation8 + $0x30] sm:$0xf] }
  0xac   :  { %v183_v35 = vrot.slane %v182_v26, 1  ;;  %v175_v36 = vpop.f32.mrf.mxu1  ;;  %v886_v20 = vor.u32 %v1003_v17, %v883_v18  ;;  %v1001_v32 = vld [vmem:[#allocation8 + $0xb4] sm:$0xf]  ;;  %v995_v18 = vld [vmem:[#allocation8 + $0x84] sm:$0xf] }
  0xad   :  { %v189_v40 = vrot.slane %v188_v31, 1 }
  0xae   :  { %v184_v44 = vadd.f32 %v183_v35, %v182_v26  ;;  %v810_v26 = vor.u32 %v986_v23, %v809_v22  ;;  %494 = vmatpush.bf16.msrb.mxu1 %v886_v20  ;;  %v875_v35 = vld [vmem:[#allocation8 + $0xb8] sm:$0xf0] }
  0xaf   :  { %v190_v49 = vadd.f32 %v189_v40, %v188_v31  ;;  %v811_v31 = vld [vmem:[#allocation8 + $0x38] sm:$0xf0]  ;;  %v878_v37 = vor.u32 %v1001_v32, %v875_v35  ;;  %v865_v40 = vld [vmem:[#allocation8 + $0xa0] sm:$0xf] }
  0xb0   :  { %v191_v52 = vmul.f32 0.125, %v184_v44  ;;  %456 = vmatpush.bf16.msra.mxu2 %v810_v26  ;;  %v814_v34 = vor.u32 %v985_v28, %v811_v31  ;;  %v983_v44 = vld [vmem:[#allocation8 + $0x24] sm:$0xf]  ;;  %v866_v47 = vor.u32 %v1000_v43, %v865_v40  ;;  %v249_v43 = vperm.slane %v178_v38, 1 }
  0xb1   :  { %v192_v56 = vmul.f32 0.125, %v190_v49  ;;  %v806_v48 = vor.u32 %v983_v44, %v803_v45  ;;  %v999_v49 = vld [vmem:[#allocation8 + $0xa4] sm:$0xf] }
  0xb2   :  { %v1304_v59 = vsub.f32 %v160_v13, %v191_v52  ;;  %v819_v13 = vld [vmem:[#allocation8 + $0x48] sm:$0xf0]  ;;  %495 = vmatpush.bf16.msrb.mxu1 %v878_v37  ;;  %v870_v52 = vor.u32 %v999_v49, %v867_v50 }
  0xb3   :  { %v1306_v63 = vsub.f32 %v173_v15, %v192_v56  ;;  %v882_v15 = vor.u32 %v1004_v11, %v881_v8  ;;  %v822_v16 = vor.u32 %v987_v12, %v819_v13  ;;  %v857_v56 = vld [vmem:[#allocation8 + $0x90] sm:$0xf]  ;;  %v980_v8 = vld [vmem:[#allocation8 + $0x4] sm:$0xf0]  ;;  %v849_v11 = vld [vmem:[#allocation8 + $0x80] sm:$0xf] }
  0xb4   :  { %v195_v4 = vmul.f32 %v1304_v59, %v1304_v59  ;;  %457 = vmatpush.bf16.msra.mxu2 %v802_v42  ;;  %v858_v1 = vor.u32 %v998_v60, %v857_v56  ;;  %v786_v10 = vor.u32 %v980_v8, %v785_v7  ;;  %v996_v12 = vld [vmem:[#allocation8 + $0x84] sm:$0xf0]  ;;  %v248_v42 = vperm.slane %v178_v38, 0  ;;  %v1021_v38 = vld [vmem:[#allocation11 + $0x50] sm:$0xff] }
  0xb5   :  { %v196_v9 = vmul.f32 %v1306_v63, %v1306_v63  ;;  %468 = vmatpush.bf16.msra.mxu3 %v882_v15  ;;  %481 = vmatpush.bf16.msrb.mxu0 %v822_v16  ;;  %v979_v15 = vld [vmem:[#allocation8 + $0x4] sm:$0xf]  ;;  %v787_v16 = vld [vmem:[#allocation8 + $0x8] sm:$0xf0] }
  0xb6   :  { %v197_v14 = vrot.slane %v195_v4, 4  ;;  %496 = vmatpush.bf16.msrb.mxu1 %v870_v52  ;;  %v790_v17 = vor.u32 %v979_v15, %v787_v16 }
  0xb7   :  { %v203_v19 = vrot.slane %v196_v9, 4 }
  0xb8   :  { %v198_v21 = vadd.f32 %v197_v14, %v195_v4  ;;  %v859_v4 = vld [vmem:[#allocation8 + $0x98] sm:$0xf0]  ;;  %458 = vmatpush.bf16.msra.mxu2 %v794_v58  ;;  %v850_v14 = vor.u32 %v996_v12, %v849_v11 }
  0xb9   :  { %v204_v25 = vadd.f32 %v203_v19, %v196_v9  ;;  %469 = vmatpush.bf16.msra.mxu3 %v874_v30  ;;  %482 = vmatpush.bf16.msrb.mxu0 %v814_v34  ;;  %v862_v6 = vor.u32 %v997_v3, %v859_v4  ;;  %v851_v19 = vld [vmem:[#allocation8 + $0x88] sm:$0xf0]  ;;  %v177_v34 = vld [vmem:[#allocation7] sm:$0x3] }
  0xba   :  { %v199_v29 = vrot.slane %v198_v21, 2  ;;  %v854_v20 = vor.u32 %v995_v18, %v851_v19  ;;  %v1016_v19 = vld [vmem:[#allocation11 + $0x28] sm:$0xff] }
  0xbb   :  { %v205_v33 = vrot.slane %v204_v25, 2  ;;  %497 = vmatpush.bf16.msrb.mxu1 %v862_v6  ;;  %v1026_v6 = vld [vmem:[#allocation11 + $0x78] sm:$0xff] }
  0xbc   :  { %v200_v36 = vadd.f32 %v199_v29, %v198_v21  ;;  %459 = vmatpush.bf16.msra.mxu2 %v786_v10 }
  0xbd   :  { %v206_v41 = vadd.f32 %v205_v33, %v204_v25  ;;  %470 = vmatpush.bf16.msra.mxu3 %v866_v47  ;;  %483 = vmatpush.bf16.msrb.mxu0 %v806_v48 }
  0xbe   :  { %v201_v46 = vrot.slane %v200_v36, 1 }
  0xbf   :  { %v207_v51 = vrot.slane %v206_v41, 1  ;;  %498 = vmatpush.bf16.msrb.mxu1 %v854_v20  ;;  %v1024_v20 = vld [vmem:[#allocation11 + $0x68] sm:$0xff] }
  0xc0   :  { %v202_v53 = vadd.f32 %v201_v46, %v200_v36 }
  0xc1   :  { %v208_v57 = vadd.f32 %v207_v51, %v206_v41  ;;  %471 = vmatpush.bf16.msra.mxu3 %v858_v1  ;;  %484 = vmatpush.bf16.msrb.mxu0 %v798_v2 }
  0xc2   :  { %v209_v0 = vmul.f32 0.125, %v202_v53 }
  0xc3   :  { %v210_v5 = vmul.f32 0.125, %v208_v57 }
  0xc4   :  { %v211_v9 = vadd.f32 1e-05, %v209_v0 }
  0xc5   :  { %v212_v13 = vadd.f32 1e-05, %v210_v5  ;;  %472 = vmatpush.bf16.msra.mxu3 %v850_v14  ;;  %485 = vmatpush.bf16.msrb.mxu0 %v790_v17  ;;  %v1018_v5 = vld [vmem:[#allocation11 + $0x38] sm:$0xff]  ;;  %v1025_v14 = vld [vmem:[#allocation11 + $0x70] sm:$0xff] }
  0xc6   :  { %1039 = vrsqrt.f32 %v211_v9  ;;  %vm219_vm5 = vweird.f32 %v211_v9  ;;  %718 = vmatpush.bf16.msrb.mxu2 %v1018_v5 }
  0xc7   :  { %1041 = vrsqrt.f32 %v212_v13  ;;  %vm229_vm3 = vweird.f32 %v212_v13 }
  0xc9   :  { %731 = vmatpush.bf16.msrb.mxu3 %v1026_v6 }
  0xcc   :  { %v1040_v21 = vpop.eup %1039 }
  0xcd   :  { %v1042_v22 = vpop.eup %1041  ;;  %v214_v23 = vmul.f32 %v1040_v21, %v211_v9  ;;  %vm220_vm2 = vweird.f32 %v1040_v21  ;;  %732 = vmatpush.bf16.msrb.mxu3 %v1025_v14 }
  0xce   :  { %v224_v24 = vmul.f32 %v1042_v22, %v212_v13  ;;  %vm230_vm1 = vweird.f32 %v1042_v22  ;;  %vm221_vm7 = vmor %vm219_vm5, %vm220_vm2  ;;  %v1017_v13 = vld [vmem:[#allocation11 + $0x30] sm:$0xff] }
  0xcf   :  { %v215_v25 = vmul.f32 %v1040_v21, %v214_v23  ;;  %vm231_vm4 = vmor %vm229_vm3, %vm230_vm1  ;;  %719 = vmatpush.bf16.msrb.mxu2 %v1017_v13 }
  0xd0   :  { %v225_v26 = vmul.f32 %v1042_v22, %v224_v24 }
  0xd1   :  { %v216_v27 = vmul.f32 0.5, %v215_v25  ;;  %733 = vmatpush.bf16.msrb.mxu3 %v1024_v20  ;;  %v1015_v25 = vld [vmem:[#allocation11 + $0x20] sm:$0xff]  ;;  %v1038_v20 = vld [vmem:[%s1346_s8] ss:$0 sm:$0xff] }
  0xd2   :  { %v226_v28 = vmul.f32 0.5, %v225_v26  ;;  %v1023_v26 = vld [vmem:[#allocation11 + $0x60] sm:$0xff] }
  0xd3   :  { %v217_v29 = vsub.f32 1.5, %v216_v27  ;;  %720 = vmatpush.bf16.msrb.mxu2 %v1016_v19 }
  0xd4   :  { %v227_v30 = vsub.f32 1.5, %v226_v28 }
  0xd5   :  { %v218_v31 = vmul.f32 %v1040_v21, %v217_v29  ;;  %734 = vmatpush.bf16.msrb.mxu3 %v1023_v26 }
  0xd6   :  { %v228_v32 = vmul.f32 %v1042_v22, %v227_v30 }
  0xd7   :  { %v222_v36 = vsel %vm221_vm7, %v1040_v21, %v218_v31  ;;  %721 = vmatpush.bf16.msrb.mxu2 %v1015_v25  ;;  %v1014_v31 = vld [vmem:[#allocation11 + $0x18] sm:$0xff] }
  0xd8   :  { %v232_v33 = vsel %vm231_vm4, %v1042_v22, %v228_v32  ;;  %v1022_v32 = vld [vmem:[#allocation11 + $0x58] sm:$0xff] }
  0xd9   :  { %v235_v35 = vrot.slane %v232_v33, 7  ;;  %735 = vmatpush.bf16.msrb.mxu3 %v1022_v32 }
  0xdb   :  { %v237_v37 = vsel %vm236_vm6, %v222_v36, %v235_v35  ;;  %722 = vmatpush.bf16.msrb.mxu2 %v1014_v31 }
  0xdc   :  { %v239_v39 = vmul.f32 %v237_v37, %v177_v34  ;;  %v1013_v37 = vld [vmem:[#allocation11 + $0x10] sm:$0xff] }
  0xdd   :  { %736 = vmatpush.bf16.msrb.mxu3 %v1021_v38 }
  0xde   :  { %v242_v40 = vperm.slane %v239_v39, 1  ;;  %v241_v41 = vperm.slane %v239_v39, 0 }
  0xdf   :  { %723 = vmatpush.bf16.msrb.mxu2 %v1013_v37 }
  0xe0   :  { %v246_v44 = vmul.f32 %v242_v40, %v1306_v63  ;;  %v245_v45 = vmul.f32 %v241_v41, %v1304_v59  ;;  %v1012_v41 = vld [vmem:[#allocation11 + $0x8] sm:$0xff] }
  0xe2   :  { %v252_v46 = vadd.f32 %v248_v42, %v245_v45  ;;  %v253_v47 = vadd.f32 %v249_v43, %v246_v44  ;;  %v1020_v42 = vld [vmem:[#allocation11 + $0x48] sm:$0xff] }
  0xe3   :  { %724 = vmatpush.bf16.msrb.mxu2 %v1012_v41  ;;  %737 = vmatpush.bf16.msrb.mxu3 %v1020_v42 }
  0xe4   :  { %v254_v48 = vmul.f32 0.2, %v252_v46  ;;  %v255_v49 = vmul.f32 0.2, %v253_v47 }
  0xe6   :  { %v256_v50 = vmax.f32 %v252_v46, %v254_v48  ;;  %v257_v51 = vmax.f32 %v253_v47, %v255_v49  ;;  %v1011_v46 = vld [vmem:[#allocation11] sm:$0xff] }
  0xe7   :  { %v1019_v47 = vld [vmem:[#allocation11 + $0x40] sm:$0xff]  ;;  %725 = vmatpush.bf16.msrb.mxu2 %v1011_v46 }
  0xe8   :  { %v258_v52 = vpack.c.bf16 %v256_v50, %v256_v50  ;;  %v259_v53 = vpack.c.bf16 %v257_v51, %v257_v51  ;;  %738 = vmatpush.bf16.msrb.mxu3 %v1019_v47 }
  0xea   :  { %460 = vmatmul.bf16.vlgmr.msra.gmra.mxu2 %v258_v52  ;;  %473 = vmatmul.bf16.vlgmr.msra.gmra.mxu3 %v259_v53 }
  0xeb   :  { %486 = vmatmul.bf16.vlgmr.msrb.gmra.mxu0 %v258_v52  ;;  %499 = vmatmul.bf16.vlgmr.msrb.gmra.mxu1 %v259_v53 }
 0x168   :  { %v487_v54 = vpop.f32.mrf.mxu0  ;;  %v500_v55 = vpop.f32.mrf.mxu1 }
 0x169   :  { %v501_v56 = vadd.f32 %v500_v55, %v487_v54 }
 0x16b   :  { %v512_v57 = vrot.slane %v501_v56, 4 }
 0x16d   :  { %v513_v58 = vadd.f32 %v512_v57, %v501_v56  ;;  %v461_v63 = vpop.f32.mrf.mxu2  ;;  %v474_v60 = vpop.f32.mrf.mxu3 }
 0x16e   :  { %v475_v59 = vadd.f32 %v474_v60, %v461_v63 }
 0x16f   :  { %v514_v61 = vrot.slane %v513_v58, 2 }
 0x170   :  { %v506_v62 = vrot.slane %v475_v59, 4  ;;  %v489_v0 = vpop.f32.mrf.mxu0  ;;  %v502_v1 = vpop.f32.mrf.mxu1 }
 0x171   :  { %v515_v2 = vadd.f32 %v514_v61, %v513_v58 }
 0x172   :  { %v507_v3 = vadd.f32 %v506_v62, %v475_v59  ;;  %v504_v62 = vld [vmem:[%s1343_s5] sm:$0x3] }
 0x173   :  { %v516_v4 = vrot.slane %v515_v2, 1 }
 0x174   :  { %v508_v7 = vrot.slane %v507_v3, 2 }
 0x175   :  { %v517_v8 = vadd.f32 %v516_v4, %v515_v2  ;;  %v463_v9 = vpop.f32.mrf.mxu2  ;;  %v476_v10 = vpop.f32.mrf.mxu3 }
 0x176   :  { %v509_v11 = vadd.f32 %v508_v7, %v507_v3  ;;  %v505_v3 = vld [vmem:[#allocation10] sm:$0x3] }
 0x177   :  { %v519_v12 = vmul.f32 0.125, %v517_v8  ;;  %v574_v6 = vperm.slane %v505_v3, 0  ;;  %v575_v8 = vperm.slane %v505_v3, 1 }
 0x178   :  { %v510_v15 = vrot.slane %v509_v11, 1 }
 0x179   :  { %v1318_v16 = vsub.f32 %v501_v56, %v519_v12 }
 0x17a   :  { %v511_v17 = vadd.f32 %v510_v15, %v509_v11 }
 0x17b   :  { %v523_v18 = vmul.f32 %v1318_v16, %v1318_v16 }
 0x17c   :  { %v518_v21 = vmul.f32 0.125, %v511_v17 }
 0x17d   :  { %v530_v22 = vrot.slane %v523_v18, 4 }
 0x17e   :  { %v1322_v23 = vsub.f32 %v475_v59, %v518_v21 }
 0x17f   :  { %v531_v24 = vadd.f32 %v530_v22, %v523_v18 }
 0x180   :  { %v522_v27 = vmul.f32 %v1322_v23, %v1322_v23 }
 0x181   :  { %v532_v28 = vrot.slane %v531_v24, 2 }
 0x182   :  { %v524_v29 = vrot.slane %v522_v27, 4 }
 0x183   :  { %v533_v30 = vadd.f32 %v532_v28, %v531_v24 }
 0x184   :  { %v525_v33 = vadd.f32 %v524_v29, %v522_v27 }
 0x185   :  { %v534_v34 = vrot.slane %v533_v30, 1 }
 0x186   :  { %v526_v35 = vrot.slane %v525_v33, 2 }
 0x187   :  { %v535_v36 = vadd.f32 %v534_v34, %v533_v30 }
 0x188   :  { %v527_v39 = vadd.f32 %v526_v35, %v525_v33 }
 0x189   :  { %v537_v40 = vmul.f32 0.125, %v535_v36 }
 0x18a   :  { %v528_v43 = vrot.slane %v527_v39, 1 }
 0x18b   :  { %v539_v44 = vadd.f32 1e-05, %v537_v40 }
 0x18c   :  { %v529_v45 = vadd.f32 %v528_v43, %v527_v39 }
 0x18d   :  { %1043 = vrsqrt.f32 %v539_v44  ;;  %vm556_vm9 = vweird.f32 %v539_v44 }
 0x18e   :  { %v536_v48 = vmul.f32 0.125, %v529_v45 }
 0x190   :  { %v538_v49 = vadd.f32 1e-05, %v536_v48 }
 0x192   :  { %1045 = vrsqrt.f32 %v538_v49  ;;  %vm546_vm12 = vweird.f32 %v538_v49 }
 0x193   :  { %v1044_v50 = vpop.eup %1043 }
 0x194   :  { %v551_v51 = vmul.f32 %v1044_v50, %v539_v44  ;;  %vm557_vm8 = vweird.f32 %v1044_v50 }
 0x195   :  { %vm558_vm10 = vmor %vm556_vm9, %vm557_vm8 }
 0x196   :  { %v552_v52 = vmul.f32 %v1044_v50, %v551_v51 }
 0x198   :  { %v1046_v53 = vpop.eup %1045  ;;  %v553_v54 = vmul.f32 0.5, %v552_v52 }
 0x199   :  { %v541_v55 = vmul.f32 %v1046_v53, %v538_v49  ;;  %vm547_vm11 = vweird.f32 %v1046_v53 }
 0x19a   :  { %v554_v56 = vsub.f32 1.5, %v553_v54  ;;  %vm548_vm13 = vmor %vm546_vm12, %vm547_vm11 }
 0x19b   :  { %v542_v57 = vmul.f32 %v1046_v53, %v541_v55 }
 0x19c   :  { %v555_v58 = vmul.f32 %v1044_v50, %v554_v56 }
 0x19d   :  { %v543_v63 = vmul.f32 0.5, %v542_v57 }
 0x19e   :  { %v559_v59 = vsel %vm558_vm10, %v1044_v50, %v555_v58 }
 0x19f   :  { %v544_v60 = vsub.f32 1.5, %v543_v63  ;;  %v562_v0 = vrot.slane %v559_v59, 7 }
 0x1a1   :  { %v545_v61 = vmul.f32 %v1046_v53, %v544_v60 }
 0x1a3   :  { %v549_v1 = vsel %vm548_vm13, %v1046_v53, %v545_v61 }
 0x1a4   :  { %v563_v2 = vsel %vm236_vm6, %v549_v1, %v562_v0 }
 0x1a5   :  { %v565_v4 = vmul.f32 %v563_v2, %v504_v62 }
 0x1a7   :  { %v567_v5 = vperm.slane %v565_v4, 0  ;;  %v568_v7 = vperm.slane %v565_v4, 1 }
 0x1a9   :  { %v571_v9 = vmul.f32 %v567_v5, %v1322_v23  ;;  %v572_v10 = vmul.f32 %v568_v7, %v1318_v16 }
 0x1ab   :  { %v578_v11 = vadd.f32 %v574_v6, %v571_v9  ;;  %v579_v12 = vadd.f32 %v575_v8, %v572_v10 }
 0x1ad   :  { %v580_v13 = vmul.f32 0.2, %v578_v11  ;;  %v581_v14 = vmul.f32 0.2, %v579_v12 }
 0x1af   :  { %v582_v15 = vmax.f32 %v578_v11, %v580_v13  ;;  %v583_v17 = vmax.f32 %v579_v12, %v581_v14 }
 0x1b1   :  { %v584_v18 = vpack.c.bf16 %v582_v15, %v582_v15  ;;  %v585_v19 = vpack.c.bf16 %v583_v17, %v583_v17 }
 0x1b3   :  { %726 = vmatmul.bf16.vlgmr.msrb.gmra.mxu2 %v584_v18  ;;  %739 = vmatmul.bf16.vlgmr.msrb.gmra.mxu3 %v585_v19 }
 0x236   :  { %v727_v21 = vpop.f32.mrf.mxu2  ;;  %v740_v22 = vpop.f32.mrf.mxu3 }
 0x237   :  { %v728_v16 = vadd.f32 %v1038_v20, %v727_v21 }
 0x239   :  { %v741_v23 = vadd.f32 %v740_v22, %v728_v16 }
 0x23b   :  { %744 = vst [vmem:[#allocation13] sm:$0xff] %v741_v23 }
 0x23c   :  { %755 = dma.vmem_to_hbm [thread:$0]  %s751_s21, 128, %s753_s1, [#allocation4]  }
 0x23e   :  { %v729_v24 = vpop.f32.mrf.mxu2  ;;  %v742_v25 = vpop.f32.mrf.mxu3 }
 0x23f   :  { %1223 = dma.done.wait [#allocation4], 128  }
 0x240   :  { %1224 = vsyncadd [#allocation4], 4294967168 }
 0x241   :  { %760 = vsyncpa [#allocation3], 1 }
 0x242   :  { %761 = vsyncpa [#allocation6], 1 }
 0x243   :  { %762 = vsyncpa [#allocation9], 1 }
 0x244   :  { %763 = vsyncpa [#allocation12], 1 }
 0x245   :  { %764 = vsyncpa [#allocation4], 1 }

</bundles_post_ra>
